<compile_context>
chip_gen: v7x
topology: tpu7x:2x2x1
jax: 0.10.0
libtpu: 0.0.40
codegen_flags: <defaults>
</compile_context>

<pallas_src>
import jax
import jax.numpy as jnp
from jax.experimental import pallas as pl
from jax.experimental.pallas import tpu as pltpu

INPUT_SIZE = 63
HIDDEN1 = 512
HIDDEN2 = 512
NUM_CLASSES = 2

K_PAD = 128  # input features padded 63 -> 128; index 63 is the fc1-bias "ones" column
N_PAD = 128  # output classes padded 2 -> 128 (lane-dense output stores)


def mlp_kernel(x_ref, w1_ref, w2_ref, b2_ref, w3_ref, b3_ref, o_ref):
    # fc1 (+ bias folded into w1 row INPUT_SIZE) + ReLU; bf16 MXU, f32 accumulation.
    h1 = jnp.dot(x_ref[...], w1_ref[...], preferred_element_type=jnp.float32)
    h1 = jnp.maximum(h1, 0.0).astype(jnp.bfloat16)
    # fc2 + ReLU
    h2 = jnp.dot(h1, w2_ref[...], preferred_element_type=jnp.float32)
    h2 = jnp.maximum(h2 + b2_ref[...], 0.0).astype(jnp.bfloat16)
    # fc3 (logits, padded to 128 lanes; no activation). bf16 store halves writeback.
    out = jnp.dot(h2, w3_ref[...], preferred_element_type=jnp.float32)
    o_ref[...] = (out + b3_ref[...]).astype(o_ref.dtype)


def prepare_params(w1, b1, w2, b2, w3, b3):
    """One-time (outside the hot path) padding + bf16 cast of the weights."""
    w1p = (jnp.zeros((K_PAD, HIDDEN1), jnp.float32)
           .at[:INPUT_SIZE].set(w1)
           .at[INPUT_SIZE].set(jnp.reshape(b1, (HIDDEN1,)))  # folded fc1 bias row
           .astype(jnp.bfloat16))
    w2p = w2.astype(jnp.bfloat16)
    w3p = (jnp.zeros((HIDDEN2, N_PAD), jnp.float32)
           .at[:, :NUM_CLASSES].set(w3).astype(jnp.bfloat16))
    b2p = jnp.reshape(b2, (1, HIDDEN2)).astype(jnp.float32)
    b3p = (jnp.zeros((1, N_PAD), jnp.float32)
           .at[:, :NUM_CLASSES].set(jnp.reshape(b3, (1, NUM_CLASSES))))
    return w1p, w2p, b2p, w3p, b3p


def _choose_tiling(B, tm_max):
    assert tm_max % 16 == 0
    # >= 2 grid steps when B >= 16 so both v7x TensorCores get a tile.
    n_steps = max(2, pl.cdiv(B, tm_max)) if B >= 16 else 1
    # Tile is a multiple of 16 (bf16 sublane packing), minimal over-padding.
    tm = min(tm_max, ((pl.cdiv(B, n_steps) + 15) // 16) * 16)
    return tm, n_steps * tm


def _mlp_forward(x, w1p, w2p, b2p, w3p, b3p, *, tm_max=512):
    B = x.shape[0]
    tm, b_pad = _choose_tiling(B, tm_max)
    grid = (b_pad // tm,)

    # Pad batch -> b_pad rows, features 63 -> 128, cast to bf16, and set the
    # fc1-bias "ones" column (exact: padded w1 rows beyond 63 are zero).
    xp = (jnp.zeros((b_pad, K_PAD), jnp.bfloat16)
          .at[:B, :INPUT_SIZE].set(x.astype(jnp.bfloat16))
          .at[:B, INPUT_SIZE].set(1.0))

    flops = 2 * b_pad * (K_PAD * HIDDEN1 + HIDDEN1 * HIDDEN2 + HIDDEN2 * N_PAD)
    bytes_accessed = (
        xp.size * xp.dtype.itemsize
        + sum(int(a.size) * a.dtype.itemsize for a in (w1p, w2p, b2p, w3p, b3p))
        + b_pad * N_PAD * 2)

    batch_block = lambda i: (i, 0)
    resident = lambda i: (0, 0)  # constant block index -> stays in VMEM across steps

    out_p = pl.pallas_call(
        mlp_kernel,
        out_shape=jax.ShapeDtypeStruct((b_pad, N_PAD), jnp.bfloat16),
        grid=grid,
        in_specs=[
            pl.BlockSpec((tm, K_PAD), batch_block),
            pl.BlockSpec(w1p.shape, resident),
            pl.BlockSpec(w2p.shape, resident),
            pl.BlockSpec(b2p.shape, resident),
            pl.BlockSpec(w3p.shape, resident),
            pl.BlockSpec(b3p.shape, resident),
        ],
        out_specs=pl.BlockSpec((tm, N_PAD), batch_block),
        compiler_params=pltpu.CompilerParams(
            dimension_semantics=("parallel",),
            vmem_limit_bytes=32 << 20,
        ),
        cost_estimate=pl.CostEstimate(
            flops=flops, transcendentals=0, bytes_accessed=bytes_accessed),
    )(xp, w1p, w2p, b2p, w3p, b3p)

    return out_p[:B, :NUM_CLASSES].astype(jnp.float32)


mlp_forward = jax.jit(_mlp_forward, static_argnames=("tm_max",))


def init_params(key):
    # Deterministic init mimicking PyTorch Linear default: U(-1/sqrt(fan_in), +).
    ks = jax.random.split(key, 6)

    def linear(kw, kb, fan_in, fan_out):
        bound = 1.0 / jnp.sqrt(jnp.float32(fan_in))
        w = jax.random.uniform(kw, (fan_in, fan_out), jnp.float32, -bound, bound)
        b = jax.random.uniform(kb, (fan_out,), jnp.float32, -bound, bound)
        return w, b

    w1, b1 = linear(ks[0], ks[1], INPUT_SIZE, HIDDEN1)
    w2, b2 = linear(ks[2], ks[3], HIDDEN1, HIDDEN2)
    w3, b3 = linear(ks[4], ks[5], HIDDEN2, NUM_CLASSES)
    return w1, b1, w2, b2, w3, b3


def reference(x, w1, b1, w2, b2, w3, b3):
    # Pure-JAX reference mirroring the kernel numerics:
    # bf16 weights/activations feeding the matmuls, f32 accumulation, bf16 logits.
    bf = lambda a: a.astype(jnp.bfloat16).astype(jnp.float32)
    h1 = jnp.maximum(bf(x) @ bf(w1) + bf(b1), 0.0)
    h2 = jnp.maximum(bf(h1) @ bf(w2) + b2, 0.0)
    out = bf(h2) @ bf(w3) + b3
    return out.astype(jnp.bfloat16).astype(jnp.float32)


if __name__ == "__main__":
    key = jax.random.PRNGKey(0)
    k_params, k_x1, k_x2 = jax.random.split(key, 3)

    params = init_params(k_params)
    prepped = prepare_params(*params)

    # Exercise both the single-tile (B=8) and multi-tile / 2-step (B=40) paths.
    for kx, B in ((k_x1, 8), (k_x2, 40)):
        x = jax.random.normal(kx, (B, INPUT_SIZE), jnp.float32)
        out = jax.block_until_ready(mlp_forward(x, *prepped))
        ref = reference(x, *params)
        assert out.shape == (B, NUM_CLASSES)
        assert jnp.allclose(out, ref, atol=2e-2, rtol=2e-2), (
            f"B={B}: max abs err {jnp.max(jnp.abs(out - ref))}")

    print("KERNEL_OK")
</pallas_src>

<mosaic_0001>
module attributes {stable_mosaic.version = 11 : i64} {
  func.func @mlp_kernel(%arg0: i32, %arg1: memref<16x128xbf16, #tpu.memory_space<vmem>>, %arg2: memref<128x512xbf16, #tpu.memory_space<vmem>>, %arg3: memref<512x512xbf16, #tpu.memory_space<vmem>>, %arg4: memref<1x512xf32, #tpu.memory_space<vmem>>, %arg5: memref<512x128xbf16, #tpu.memory_space<vmem>>, %arg6: memref<1x128xf32, #tpu.memory_space<vmem>>, %arg7: memref<16x128xbf16, #tpu.memory_space<vmem>>) attributes {dimension_semantics = [#tpu.dimension_semantics<parallel>], iteration_bounds = array<i64: 1>, scalar_prefetch = 0 : i64, scratch_operands = 0 : i64, tpu.core_type = #tpu.core_type<tc>, window_params = [{transform_indices = @transform_0, window_bounds = array<i64: 16, 128>}, {pipeline_mode = #tpu.pipeline_mode<synchronous>, transform_indices = @transform_1, window_bounds = array<i64: 128, 512>}, {pipeline_mode = #tpu.pipeline_mode<synchronous>, transform_indices = @transform_2, window_bounds = array<i64: 512, 512>}, {pipeline_mode = #tpu.pipeline_mode<synchronous>, transform_indices = @transform_3, window_bounds = array<i64: 1, 512>}, {pipeline_mode = #tpu.pipeline_mode<synchronous>, transform_indices = @transform_4, window_bounds = array<i64: 512, 128>}, {pipeline_mode = #tpu.pipeline_mode<synchronous>, transform_indices = @transform_5, window_bounds = array<i64: 1, 128>}, {transform_indices = @transform_6, window_bounds = array<i64: 16, 128>}]} {
    %c0 = arith.constant 0 : index
    %c0_0 = arith.constant 0 : index
    %0 = vector.load %arg1[%c0, %c0_0] : memref<16x128xbf16, #tpu.memory_space<vmem>>, vector<16x128xbf16>
    %c0_1 = arith.constant 0 : index
    %c0_2 = arith.constant 0 : index
    %1 = vector.load %arg2[%c0_1, %c0_2] : memref<128x512xbf16, #tpu.memory_space<vmem>>, vector<128x512xbf16>
    %cst = arith.constant dense<0.000000e+00> : vector<16x512xf32>
    %2 = tpu.matmul %0, %1, %cst {dimension_numbers = #tpu.dot_dimension_numbers<[1], [0], [0], [1], [0, 0, 1, 1], [], []>} : vector<16x128xbf16>, vector<128x512xbf16>, vector<16x512xf32> -> vector<16x512xf32>
    %cst_3 = arith.constant 0.000000e+00 : f32
    %3 = vector.broadcast %cst_3 : f32 to vector<16x512xf32>
    %4 = arith.maximumf %2, %3 : vector<16x512xf32>
    %5 = arith.truncf %4 : vector<16x512xf32> to vector<16x512xbf16>
    %c0_4 = arith.constant 0 : index
    %c0_5 = arith.constant 0 : index
    %6 = vector.load %arg3[%c0_4, %c0_5] : memref<512x512xbf16, #tpu.memory_space<vmem>>, vector<512x512xbf16>
    %cst_6 = arith.constant dense<0.000000e+00> : vector<16x512xf32>
    %7 = tpu.matmul %5, %6, %cst_6 {dimension_numbers = #tpu.dot_dimension_numbers<[1], [0], [0], [1], [0, 0, 1, 1], [], []>} : vector<16x512xbf16>, vector<512x512xbf16>, vector<16x512xf32> -> vector<16x512xf32>
    %c0_7 = arith.constant 0 : index
    %c0_8 = arith.constant 0 : index
    %8 = vector.load %arg4[%c0_7, %c0_8] : memref<1x512xf32, #tpu.memory_space<vmem>>, vector<1x512xf32>
    %9 = vector.broadcast %8 : vector<1x512xf32> to vector<16x512xf32>
    %10 = arith.addf %7, %9 : vector<16x512xf32>
    %cst_9 = arith.constant 0.000000e+00 : f32
    %11 = vector.broadcast %cst_9 : f32 to vector<16x512xf32>
    %12 = arith.maximumf %10, %11 : vector<16x512xf32>
    %13 = arith.truncf %12 : vector<16x512xf32> to vector<16x512xbf16>
    %c0_10 = arith.constant 0 : index
    %c0_11 = arith.constant 0 : index
    %14 = vector.load %arg5[%c0_10, %c0_11] : memref<512x128xbf16, #tpu.memory_space<vmem>>, vector<512x128xbf16>
    %cst_12 = arith.constant dense<0.000000e+00> : vector<16x128xf32>
    %15 = tpu.matmul %13, %14, %cst_12 {dimension_numbers = #tpu.dot_dimension_numbers<[1], [0], [0], [1], [0, 0, 1, 1], [], []>} : vector<16x512xbf16>, vector<512x128xbf16>, vector<16x128xf32> -> vector<16x128xf32>
    %c0_13 = arith.constant 0 : index
    %c0_14 = arith.constant 0 : index
    %16 = vector.load %arg6[%c0_13, %c0_14] : memref<1x128xf32, #tpu.memory_space<vmem>>, vector<1x128xf32>
    %17 = vector.broadcast %16 : vector<1x128xf32> to vector<16x128xf32>
    %18 = arith.addf %15, %17 : vector<16x128xf32>
    %19 = arith.truncf %18 : vector<16x128xf32> to vector<16x128xbf16>
    %c0_15 = arith.constant 0 : index
    %c0_16 = arith.constant 0 : index
    %20 = vector.load %arg7[%c0_15, %c0_16] : memref<16x128xbf16, #tpu.memory_space<vmem>>, vector<16x128xbf16>
    tpu.vector_store %arg7[%c0_15, %c0_16], %19 {strides = array<i32>} : memref<16x128xbf16, #tpu.memory_space<vmem>>, vector<16x128xbf16>,
    return
  }
  func.func @transform_0(%arg0: i32) -> (i32, i32) {
    %c0_i32 = arith.constant 0 : i32
    %c0_i32_0 = arith.constant 0 : i32
    return %arg0, %c0_i32 : i32, i32
  }
  func.func @transform_1(%arg0: i32) -> (i32, i32) {
    %c0_i32 = arith.constant 0 : i32
    %c0_i32_0 = arith.constant 0 : i32
    %c0_i32_1 = arith.constant 0 : i32
    return %c0_i32, %c0_i32_0 : i32, i32
  }
  func.func @transform_2(%arg0: i32) -> (i32, i32) {
    %c0_i32 = arith.constant 0 : i32
    %c0_i32_0 = arith.constant 0 : i32
    %c0_i32_1 = arith.constant 0 : i32
    return %c0_i32, %c0_i32_0 : i32, i32
  }
  func.func @transform_3(%arg0: i32) -> (i32, i32) {
    %c0_i32 = arith.constant 0 : i32
    %c0_i32_0 = arith.constant 0 : i32
    %c0_i32_1 = arith.constant 0 : i32
    return %c0_i32, %c0_i32_0 : i32, i32
  }
  func.func @transform_4(%arg0: i32) -> (i32, i32) {
    %c0_i32 = arith.constant 0 : i32
    %c0_i32_0 = arith.constant 0 : i32
    %c0_i32_1 = arith.constant 0 : i32
    return %c0_i32, %c0_i32_0 : i32, i32
  }
  func.func @transform_5(%arg0: i32) -> (i32, i32) {
    %c0_i32 = arith.constant 0 : i32
    %c0_i32_0 = arith.constant 0 : i32
    %c0_i32_1 = arith.constant 0 : i32
    return %c0_i32, %c0_i32_0 : i32, i32
  }
  func.func @transform_6(%arg0: i32) -> (i32, i32) {
    %c0_i32 = arith.constant 0 : i32
    %c0_i32_0 = arith.constant 0 : i32
    return %arg0, %c0_i32 : i32, i32
  }
}

</mosaic_0001>

<bundles_post_ra>
// kernel: _mlp_forward.1
= control target key start
LH: loop header
LB: loop body
LE: loop exit
PB: predicated region body
PF: predicated region fallthrough
CT: control target
= control target key end

     0   :  { %11 = vsyncpa [#allocation3], 0  ;;  %s2414_s0 = inlined_call_operand.vmem [shape: bf16[16,128], index: 0, kind: input, shape index: {}]   ;;  %s2415_s1 = inlined_call_operand.hbm [shape: bf16[128,512], index: 1, kind: input, shape index: {}]   ;;  %s2416_s2 = inlined_call_operand.hbm [shape: bf16[512,512], index: 2, kind: input, shape index: {}]   ;;  %s2417_s3 = inlined_call_operand.vmem [shape: f32[1,512], index: 3, kind: input, shape index: {}]   ;;  %s2418_s4 = inlined_call_operand.hbm [shape: bf16[512,128], index: 4, kind: input, shape index: {}]   ;;  %s2419_s5 = inlined_call_operand.vmem [shape: f32[1,128], index: 5, kind: input, shape index: {}]   ;;  %s2420_s6 = inlined_call_operand.vmem [shape: bf16[16,128], index: 6, kind: output, shape index: {}]  }
   0x1   :  { %12 = vsyncpa [#allocation5], 0  ;;  %s2312_s21 = smov [#allocation4]   ;;  %s2313_s23 = smov [#allocation2]  }
   0x2   :  { %s32_s22 = sshll.u32 %s2312_s21, 4  ;;  %s20_s24 = sshll.u32 %s2313_s23, 4  ;;  %s33_s22 = int_to_ptr.vmem [resolvable:$true] %s32_s22  ;;  %s2355_s24 = int_to_ptr.vmem [resolvable:$true] %s20_s24 }
   0x3   :  { %s2242_s27 = scalar_lea.hbm %s2416_s2, 16384 }
   0x4   :  { %p2243_p0 = scmp.ne.s32.totalorder %s2416_s2, %s2242_s27  ;;  %p2246_p1 = scmp.lt.u32.totalorder %s2242_s27, %s2416_s2 }
   0x6   :  { %p2248_p2 = pnand %p2246_p1, %p2243_p0 }
   0x8   :  { %2251 = shalt.err (!%p2248_p2)
}
   0x9   :  { %s2252_s8 = scalar_lea.vmem %s33_s22, 16384  ;;  %p2257_p4 = scmp.lt.s32.totalorder %s33_s22, %s33_s22 }
   0xa   :  { %p2253_p3 = scmp.ne.s32.totalorder %s33_s22, %s2252_s8  ;;  %p2258_p5 = scmp.lt.s32.totalorder %s2252_s8, %s2252_s8 }
   0xc   :  { %p2259_p6 = por %p2258_p5, %p2257_p4 }
   0xe   :  { %p2260_p7 = pnand %p2259_p6, %p2253_p3 }
  0x10   :  { %2263 = shalt.err (!%p2260_p7)
}
  0x11   :  { %s2314_s9 = smov 256   ;;  %s2315_s10 = smov 16  }
  0x12   :  { %38 = dma.hbm_to_vmem [thread:$0]  %s2416_s2, 16384, %s33_s22, [#allocation5], %s2314_s9, %s2314_s9, %s2315_s10  }
  0x13   :  { %s2264_s15 = scalar_lea.hbm %s2415_s1, 4096 }
  0x14   :  { %p2265_p8 = scmp.ne.s32.totalorder %s2415_s1, %s2264_s15  ;;  %p2268_p9 = scmp.lt.u32.totalorder %s2264_s15, %s2415_s1 }
  0x16   :  { %p2270_p10 = pnand %p2268_p9, %p2265_p8 }
  0x18   :  { %2273 = shalt.err (!%p2270_p10)
}
  0x19   :  { %s2274_s20 = scalar_lea.vmem %s2355_s24, 4096  ;;  %p2279_p12 = scmp.lt.s32.totalorder %s2355_s24, %s2355_s24 }
  0x1a   :  { %p2275_p11 = scmp.ne.s32.totalorder %s2355_s24, %s2274_s20  ;;  %p2280_p13 = scmp.lt.s32.totalorder %s2274_s20, %s2274_s20 }
  0x1c   :  { %p2281_p0 = por %p2280_p13, %p2279_p12 }
  0x1e   :  { %p2282_p1 = pnand %p2281_p0, %p2275_p11 }
  0x20   :  { %2285 = shalt.err (!%p2282_p1)
}
  0x21   :  { %26 = dma.hbm_to_vmem [thread:$0]  %s2415_s1, 4096, %s2355_s24, [#allocation3], %s2314_s9, %s2314_s9, %s2315_s10  }
  0x22   :  { %s2316_s22 = smov [#allocation6]   ;;  %s2286_s27 = scalar_lea.hbm %s2418_s4, 4096 }
  0x23   :  { %s46_s23 = sshll.u32 %s2316_s22, 4  ;;  %p2287_p2 = scmp.ne.s32.totalorder %s2418_s4, %s2286_s27  ;;  %s47_s23 = int_to_ptr.vmem [resolvable:$true] %s46_s23 }
  0x24   :  { %p2290_p3 = scmp.lt.u32.totalorder %s2286_s27, %s2418_s4 }
  0x26   :  { %p2292_p4 = pnand %p2290_p3, %p2287_p2 }
  0x28   :  { %2295 = shalt.err (!%p2292_p4)
}
  0x29   :  { %s2296_s8 = scalar_lea.vmem %s47_s23, 4096  ;;  %p2301_p6 = scmp.lt.s32.totalorder %s47_s23, %s47_s23 }
  0x2a   :  { %p2297_p5 = scmp.ne.s32.totalorder %s47_s23, %s2296_s8  ;;  %p2302_p7 = scmp.lt.s32.totalorder %s2296_s8, %s2296_s8 }
  0x2c   :  { %p2303_p8 = por %p2302_p7, %p2301_p6 }
  0x2e   :  { %p2304_p9 = pnand %p2303_p8, %p2297_p5 }
  0x30   :  { %2307 = shalt.err (!%p2304_p9)
}
  0x31   :  { %s2317_s1 = smov 64   ;;  %s2318_s24 = smov 4  }
  0x32   :  { %52 = dma.hbm_to_vmem [thread:$0]  %s2418_s4, 4096, %s47_s23, [#allocation5], %s2317_s1, %s2317_s1, %s2318_s24  }
  0x33   :  { %2308 = dma.done.wait [#allocation3], 4096  }
  0x34   :  { %2309 = vsyncadd [#allocation3], 4294963200 }
  0x35   :  { %2310 = dma.done.wait [#allocation5], 20480  }
  0x36   :  { %2311 = vsyncadd [#allocation5], 4294946816  ;;  %v2319_v0 = vmov 0   ;;  %v1969_v1 = vld [vmem:[#allocation2 + $0x4] ss:$16 sps:$4 sm:$0xff]  }
  0x37   :  { %297 = vmatprep.mubr.bf16.mxu0 %v2319_v0  ;;  %340 = vmatprep.mubr.bf16.mxu1 %v2319_v0  ;;  %v1971_v2 = vld [vmem:[#allocation2] ss:$16 sps:$4 sm:$0xff]   ;;  %v1972_v3 = vld [vmem:[#allocation2 + $0x24] ss:$16 sps:$4 sm:$0xff]   ;;  %v1994_v10 = vld [vmem:[#allocation2 + $0xc] ss:$16 sps:$4 sm:$0xff]  }
  0x38   :  { %265 = vmatprep.subr.bf16.mxu0 %v1969_v1  ;;  %v1974_v4 = vld [vmem:[#allocation2 + $0x20] ss:$16 sps:$4 sm:$0xff]   ;;  %v1975_v5 = vld [vmem:[#allocation2 + $0x44] ss:$16 sps:$4 sm:$0xff]   ;;  %v1996_v11 = vld [vmem:[#allocation2 + $0x8] ss:$16 sps:$4 sm:$0xff]   ;;  %308 = vmatprep.subr.bf16.mxu1 %v1994_v10 }
  0x39   :  { %266 = vmatpush1.bf16.msra.mxu0 %v1971_v2  ;;  %v1977_v6 = vld [vmem:[#allocation2 + $0x40] ss:$16 sps:$4 sm:$0xff]   ;;  %v1978_v7 = vld [vmem:[#allocation2 + $0x64] ss:$16 sps:$4 sm:$0xff]   ;;  %v1997_v12 = vld [vmem:[#allocation2 + $0x2c] ss:$16 sps:$4 sm:$0xff]   ;;  %309 = vmatpush1.bf16.msra.mxu1 %v1996_v11 }
  0x3a   :  { %267 = vmatprep.subr.bf16.mxu0 %v1972_v3  ;;  %v1980_v8 = vld [vmem:[#allocation2 + $0x60] ss:$16 sps:$4 sm:$0xff]   ;;  %v1981_v9 = vld [vmem:[#allocation2 + $0x84] ss:$16 sps:$4 sm:$0xff]   ;;  %v1999_v14 = vld [vmem:[#allocation2 + $0x28] ss:$16 sps:$4 sm:$0xff]   ;;  %310 = vmatprep.subr.bf16.mxu1 %v1997_v12 }
  0x3b   :  { %v1983_v13 = vld [vmem:[#allocation2 + $0x80] ss:$16 sps:$4 sm:$0xff]   ;;  %v1984_v15 = vld [vmem:[#allocation2 + $0xa4] ss:$16 sps:$4 sm:$0xff]   ;;  %v2000_v16 = vld [vmem:[#allocation2 + $0x4c] ss:$16 sps:$4 sm:$0xff]  }
  0x3c   :  { %v1986_v17 = vld [vmem:[#allocation2 + $0xa0] ss:$16 sps:$4 sm:$0xff]   ;;  %v2002_v18 = vld [vmem:[#allocation2 + $0x48] ss:$16 sps:$4 sm:$0xff]   ;;  %v1987_v19 = vld [vmem:[#allocation2 + $0xc4] ss:$16 sps:$4 sm:$0xff]  }
  0x3d   :  { %268 = vmatpush1.bf16.msra.mxu0 %v1974_v4  ;;  %311 = vmatpush1.bf16.msra.mxu1 %v1999_v14  ;;  %v2003_v20 = vld [vmem:[#allocation2 + $0x6c] ss:$16 sps:$4 sm:$0xff]   ;;  %v1989_v21 = vld [vmem:[#allocation2 + $0xc0] ss:$16 sps:$4 sm:$0xff]   ;;  %v2005_v22 = vld [vmem:[#allocation2 + $0x68] ss:$16 sps:$4 sm:$0xff]  }
  0x3e   :  { %269 = vmatprep.subr.bf16.mxu0 %v1975_v5  ;;  %312 = vmatprep.subr.bf16.mxu1 %v2000_v16  ;;  %v1990_v23 = vld [vmem:[#allocation2 + $0xe4] ss:$16 sps:$4 sm:$0xff]   ;;  %v2006_v24 = vld [vmem:[#allocation2 + $0x8c] ss:$16 sps:$4 sm:$0xff]   ;;  %v1992_v25 = vld [vmem:[#allocation2 + $0xe0] ss:$16 sps:$4 sm:$0xff]  }
  0x3f   :  { %v2008_v26 = vld [vmem:[#allocation2 + $0x88] ss:$16 sps:$4 sm:$0xff]   ;;  %v2009_v27 = vld [vmem:[#allocation2 + $0xac] ss:$16 sps:$4 sm:$0xff]   ;;  %v2020_v28 = vld [vmem:[#allocation4 + $0x4] ss:$16 sps:$4 sm:$0xff]  }
  0x40   :  { %v1993_v29 = vld [vmem:[%s2414_s0] sm:$0xff]   ;;  %v2011_v30 = vld [vmem:[#allocation2 + $0xa8] ss:$16 sps:$4 sm:$0xff]   ;;  %v2012_v32 = vld [vmem:[#allocation2 + $0xcc] ss:$16 sps:$4 sm:$0xff]  }
  0x41   :  { %270 = vmatpush1.bf16.msra.mxu0 %v1977_v6  ;;  %313 = vmatpush1.bf16.msra.mxu1 %v2002_v18  ;;  %v2018_v31 = vld [vmem:[#allocation4] ss:$16 sps:$4 sm:$0xff]   ;;  %v2026_v33 = vld [vmem:[#allocation4 + $0x24] ss:$16 sps:$4 sm:$0xff]   ;;  %v2014_v34 = vld [vmem:[#allocation2 + $0xc8] ss:$16 sps:$4 sm:$0xff]  }
  0x42   :  { %271 = vmatprep.subr.bf16.mxu0 %v1978_v7  ;;  %314 = vmatprep.subr.bf16.mxu1 %v2003_v20  ;;  %v2024_v35 = vld [vmem:[#allocation4 + $0x20] ss:$16 sps:$4 sm:$0xff]   ;;  %v2015_v36 = vld [vmem:[#allocation2 + $0xec] ss:$16 sps:$4 sm:$0xff]   ;;  %v2032_v37 = vld [vmem:[#allocation4 + $0x44] ss:$16 sps:$4 sm:$0xff]  }
  0x43   :  { %v2017_v38 = vld [vmem:[#allocation2 + $0xe8] ss:$16 sps:$4 sm:$0xff]   ;;  %v2030_v39 = vld [vmem:[#allocation4 + $0x40] ss:$16 sps:$4 sm:$0xff]   ;;  %v2023_v40 = vld [vmem:[#allocation4 + $0xc] ss:$16 sps:$4 sm:$0xff]  }
  0x44   :  { %v2038_v41 = vld [vmem:[#allocation4 + $0x64] ss:$16 sps:$4 sm:$0xff]   ;;  %v2021_v42 = vld [vmem:[#allocation4 + $0x8] ss:$16 sps:$4 sm:$0xff]   ;;  %v2036_v43 = vld [vmem:[#allocation4 + $0x60] ss:$16 sps:$4 sm:$0xff]  }
  0x45   :  { %272 = vmatpush1.bf16.msra.mxu0 %v1980_v8  ;;  %315 = vmatpush1.bf16.msra.mxu1 %v2005_v22  ;;  %v2029_v44 = vld [vmem:[#allocation4 + $0x2c] ss:$16 sps:$4 sm:$0xff]   ;;  %v2044_v45 = vld [vmem:[#allocation4 + $0x84] ss:$16 sps:$4 sm:$0xff]   ;;  %v2027_v46 = vld [vmem:[#allocation4 + $0x28] ss:$16 sps:$4 sm:$0xff]  }
  0x46   :  { %273 = vmatprep.subr.bf16.mxu0 %v1981_v9  ;;  %316 = vmatprep.subr.bf16.mxu1 %v2006_v24  ;;  %v2042_v47 = vld [vmem:[#allocation4 + $0x80] ss:$16 sps:$4 sm:$0xff]   ;;  %v2035_v48 = vld [vmem:[#allocation4 + $0x4c] ss:$16 sps:$4 sm:$0xff]   ;;  %v2050_v49 = vld [vmem:[#allocation4 + $0xa4] ss:$16 sps:$4 sm:$0xff]  }
  0x47   :  { %v2033_v50 = vld [vmem:[#allocation4 + $0x48] ss:$16 sps:$4 sm:$0xff]   ;;  %v2048_v51 = vld [vmem:[#allocation4 + $0xa0] ss:$16 sps:$4 sm:$0xff]   ;;  %v2041_v52 = vld [vmem:[#allocation4 + $0x6c] ss:$16 sps:$4 sm:$0xff]  }
  0x48   :  { %v2056_v53 = vld [vmem:[#allocation4 + $0xc4] ss:$16 sps:$4 sm:$0xff]   ;;  %v2039_v54 = vld [vmem:[#allocation4 + $0x68] ss:$16 sps:$4 sm:$0xff]   ;;  %v2054_v55 = vld [vmem:[#allocation4 + $0xc0] ss:$16 sps:$4 sm:$0xff]  }
  0x49   :  { %274 = vmatpush1.bf16.msra.mxu0 %v1983_v13  ;;  %317 = vmatpush1.bf16.msra.mxu1 %v2008_v26  ;;  %v2047_v56 = vld [vmem:[#allocation4 + $0x8c] ss:$16 sps:$4 sm:$0xff]   ;;  %v2062_v57 = vld [vmem:[#allocation4 + $0xe4] ss:$16 sps:$4 sm:$0xff]   ;;  %v2045_v58 = vld [vmem:[#allocation4 + $0x88] ss:$16 sps:$4 sm:$0xff]  }
  0x4a   :  { %275 = vmatprep.subr.bf16.mxu0 %v1984_v15  ;;  %318 = vmatprep.subr.bf16.mxu1 %v2009_v27  ;;  %v2053_v59 = vld [vmem:[#allocation4 + $0xac] ss:$16 sps:$4 sm:$0xff]   ;;  %v2060_v60 = vld [vmem:[#allocation4 + $0xe0] ss:$16 sps:$4 sm:$0xff]   ;;  %v2068_v61 = vld [vmem:[#allocation4 + $0x104] ss:$16 sps:$4 sm:$0xff]  }
  0x4b   :  { %v2051_v62 = vld [vmem:[#allocation4 + $0xa8] ss:$16 sps:$4 sm:$0xff]   ;;  %v2066_v63 = vld [vmem:[#allocation4 + $0x100] ss:$16 sps:$4 sm:$0xff]   ;;  %v2059_v0 = vld [vmem:[#allocation4 + $0xcc] ss:$16 sps:$4 sm:$0xff]  }
  0x4c   :  { %v2074_v1 = vld [vmem:[#allocation4 + $0x124] ss:$16 sps:$4 sm:$0xff]   ;;  %v2057_v2 = vld [vmem:[#allocation4 + $0xc8] ss:$16 sps:$4 sm:$0xff]   ;;  %v2072_v3 = vld [vmem:[#allocation4 + $0x120] ss:$16 sps:$4 sm:$0xff]  }
  0x4d   :  { %276 = vmatpush1.bf16.msra.mxu0 %v1986_v17  ;;  %319 = vmatpush1.bf16.msra.mxu1 %v2011_v30  ;;  %v2065_v4 = vld [vmem:[#allocation4 + $0xec] ss:$16 sps:$4 sm:$0xff]   ;;  %v2080_v5 = vld [vmem:[#allocation4 + $0x144] ss:$16 sps:$4 sm:$0xff]   ;;  %v2063_v6 = vld [vmem:[#allocation4 + $0xe8] ss:$16 sps:$4 sm:$0xff]  }
  0x4e   :  { %277 = vmatprep.subr.bf16.mxu0 %v1987_v19  ;;  %320 = vmatprep.subr.bf16.mxu1 %v2012_v32  ;;  %v2078_v7 = vld [vmem:[#allocation4 + $0x140] ss:$16 sps:$4 sm:$0xff]   ;;  %v2071_v8 = vld [vmem:[#allocation4 + $0x10c] ss:$16 sps:$4 sm:$0xff]   ;;  %v2086_v9 = vld [vmem:[#allocation4 + $0x164] ss:$16 sps:$4 sm:$0xff]  }
  0x4f   :  { %v2069_v10 = vld [vmem:[#allocation4 + $0x108] ss:$16 sps:$4 sm:$0xff]   ;;  %v2084_v11 = vld [vmem:[#allocation4 + $0x160] ss:$16 sps:$4 sm:$0xff]   ;;  %v2077_v12 = vld [vmem:[#allocation4 + $0x12c] ss:$16 sps:$4 sm:$0xff]  }
  0x50   :  { %v2092_v13 = vld [vmem:[#allocation4 + $0x184] ss:$16 sps:$4 sm:$0xff]   ;;  %v2075_v14 = vld [vmem:[#allocation4 + $0x128] ss:$16 sps:$4 sm:$0xff]   ;;  %v2090_v15 = vld [vmem:[#allocation4 + $0x180] ss:$16 sps:$4 sm:$0xff]  }
  0x51   :  { %278 = vmatpush1.bf16.msra.mxu0 %v1989_v21  ;;  %321 = vmatpush1.bf16.msra.mxu1 %v2014_v34  ;;  %v2083_v16 = vld [vmem:[#allocation4 + $0x14c] ss:$16 sps:$4 sm:$0xff]   ;;  %v2098_v17 = vld [vmem:[#allocation4 + $0x1a4] ss:$16 sps:$4 sm:$0xff]   ;;  %v2081_v18 = vld [vmem:[#allocation4 + $0x148] ss:$16 sps:$4 sm:$0xff]  }
  0x52   :  { %279 = vmatprep.subr.bf16.mxu0 %v1990_v23  ;;  %322 = vmatprep.subr.bf16.mxu1 %v2015_v36  ;;  %v2096_v19 = vld [vmem:[#allocation4 + $0x1a0] ss:$16 sps:$4 sm:$0xff]   ;;  %v2089_v20 = vld [vmem:[#allocation4 + $0x16c] ss:$16 sps:$4 sm:$0xff]   ;;  %v2087_v21 = vld [vmem:[#allocation4 + $0x168] ss:$16 sps:$4 sm:$0xff]  }
  0x53   :  { %v2095_v22 = vld [vmem:[#allocation4 + $0x18c] ss:$16 sps:$4 sm:$0xff]   ;;  %v2093_v23 = vld [vmem:[#allocation4 + $0x188] ss:$16 sps:$4 sm:$0xff]   ;;  %v2104_v26 = vld [vmem:[#allocation4 + $0x1c4] ss:$16 sps:$4 sm:$0xff]  }
  0x54   :  { %v2101_v24 = vld [vmem:[#allocation4 + $0x1ac] ss:$16 sps:$4 sm:$0xff]   ;;  %v2110_v30 = vld [vmem:[#allocation4 + $0x1e4] ss:$16 sps:$4 sm:$0xff]   ;;  %v2108_v32 = vld [vmem:[#allocation4 + $0x1e0] ss:$16 sps:$4 sm:$0xff]  }
  0x55   :  { %280 = vmatpush1.bf16.msra.mxu0 %v1992_v25  ;;  %323 = vmatpush1.bf16.msra.mxu1 %v2017_v38  ;;  %v2099_v25 = vld [vmem:[#allocation4 + $0x1a8] ss:$16 sps:$4 sm:$0xff]   ;;  %v2107_v27 = vld [vmem:[#allocation4 + $0x1cc] ss:$16 sps:$4 sm:$0xff]   ;;  %v2116_v34 = vld [vmem:[#allocation4 + $0x204] ss:$16 sps:$4 sm:$0xff]  }
  0x56   :  { %1153 = vmatprep.subr.bf16.mxu0 %v2020_v28  ;;  %1239 = vmatprep.subr.bf16.mxu1 %v2023_v40  ;;  %v2102_v28 = vld [vmem:[#allocation4 + $0x1c0] ss:$16 sps:$4 sm:$0xff]  }
  0x58   :  { %298 = vmatmul.mubr.bf16.vlgmr.msra.gmra.mrb[0].mxu0 %v1993_v29  ;;  %341 = vmatmul.mubr.bf16.vlgmr.msra.gmra.mrb[0].mxu1 %v1993_v29  ;;  %v2105_v29 = vld [vmem:[#allocation4 + $0x1c8] ss:$16 sps:$4 sm:$0xff]  }
  0x59   :  { %1154 = vmatpush1.bf16.msra.mxu0 %v2018_v31  ;;  %1240 = vmatpush1.bf16.msra.mxu1 %v2021_v42  ;;  %v2113_v31 = vld [vmem:[#allocation4 + $0x1ec] ss:$16 sps:$4 sm:$0xff]  }
  0x5a   :  { %1155 = vmatprep.subr.bf16.mxu0 %v2026_v33  ;;  %1241 = vmatprep.subr.bf16.mxu1 %v2029_v44  ;;  %v2111_v33 = vld [vmem:[#allocation4 + $0x1e8] ss:$16 sps:$4 sm:$0xff]  }
  0x5d   :  { %1156 = vmatpush1.bf16.msra.mxu0 %v2024_v35  ;;  %1242 = vmatpush1.bf16.msra.mxu1 %v2027_v46  ;;  %v2119_v35 = vld [vmem:[#allocation4 + $0x20c] ss:$16 sps:$4 sm:$0xff]   ;;  %v2114_v46 = vld [vmem:[#allocation4 + $0x200] ss:$16 sps:$4 sm:$0xff]  }
  0x5e   :  { %1157 = vmatprep.subr.bf16.mxu0 %v2032_v37  ;;  %1243 = vmatprep.subr.bf16.mxu1 %v2035_v48  ;;  %v2122_v48 = vld [vmem:[#allocation4 + $0x224] ss:$16 sps:$4 sm:$0xff]  }
  0x61   :  { %1158 = vmatpush1.bf16.msra.mxu0 %v2030_v39  ;;  %1244 = vmatpush1.bf16.msra.mxu1 %v2033_v50  ;;  %v2120_v50 = vld [vmem:[#allocation4 + $0x220] ss:$16 sps:$4 sm:$0xff]  }
  0x62   :  { %1159 = vmatprep.subr.bf16.mxu0 %v2038_v41  ;;  %1245 = vmatprep.subr.bf16.mxu1 %v2041_v52  ;;  %v2128_v52 = vld [vmem:[#allocation4 + $0x244] ss:$16 sps:$4 sm:$0xff]  }
  0x65   :  { %1160 = vmatpush1.bf16.msra.mxu0 %v2036_v43  ;;  %1246 = vmatpush1.bf16.msra.mxu1 %v2039_v54 }
  0x66   :  { %1161 = vmatprep.subr.bf16.mxu0 %v2044_v45  ;;  %1247 = vmatprep.subr.bf16.mxu1 %v2047_v56 }
  0x69   :  { %1162 = vmatpush1.bf16.msra.mxu0 %v2042_v47  ;;  %1248 = vmatpush1.bf16.msra.mxu1 %v2045_v58  ;;  %v2117_v47 = vld [vmem:[#allocation4 + $0x208] ss:$16 sps:$4 sm:$0xff]  }
  0x6a   :  { %1163 = vmatprep.subr.bf16.mxu0 %v2050_v49  ;;  %1249 = vmatprep.subr.bf16.mxu1 %v2053_v59  ;;  %v2125_v49 = vld [vmem:[#allocation4 + $0x22c] ss:$16 sps:$4 sm:$0xff]   ;;  %v2129_v58 = vld [vmem:[#allocation4 + $0x248] ss:$16 sps:$4 sm:$0xff]  }
  0x6d   :  { %1164 = vmatpush1.bf16.msra.mxu0 %v2048_v51  ;;  %1250 = vmatpush1.bf16.msra.mxu1 %v2051_v62  ;;  %v2123_v51 = vld [vmem:[#allocation4 + $0x228] ss:$16 sps:$4 sm:$0xff]   ;;  %v2137_v62 = vld [vmem:[#allocation4 + $0x26c] ss:$16 sps:$4 sm:$0xff]  }
  0x6e   :  { %1165 = vmatprep.subr.bf16.mxu0 %v2056_v53  ;;  %1251 = vmatprep.subr.bf16.mxu1 %v2059_v0  ;;  %v2131_v53 = vld [vmem:[#allocation4 + $0x24c] ss:$16 sps:$4 sm:$0xff]  }
  0x71   :  { %1166 = vmatpush1.bf16.msra.mxu0 %v2054_v55  ;;  %1252 = vmatpush1.bf16.msra.mxu1 %v2057_v2 }
  0x72   :  { %1167 = vmatprep.subr.bf16.mxu0 %v2062_v57  ;;  %1253 = vmatprep.subr.bf16.mxu1 %v2065_v4  ;;  %v2126_v57 = vld [vmem:[#allocation4 + $0x240] ss:$16 sps:$4 sm:$0xff]   ;;  %v2135_v4 = vld [vmem:[#allocation4 + $0x268] ss:$16 sps:$4 sm:$0xff]  }
  0x75   :  { %1168 = vmatpush1.bf16.msra.mxu0 %v2060_v60  ;;  %1254 = vmatpush1.bf16.msra.mxu1 %v2063_v6  ;;  %v2140_v6 = vld [vmem:[#allocation4 + $0x284] ss:$16 sps:$4 sm:$0xff]  }
  0x76   :  { %1169 = vmatprep.subr.bf16.mxu0 %v2068_v61  ;;  %1255 = vmatprep.subr.bf16.mxu1 %v2071_v8  ;;  %v2134_v61 = vld [vmem:[#allocation4 + $0x264] ss:$16 sps:$4 sm:$0xff]   ;;  %v2138_v8 = vld [vmem:[#allocation4 + $0x280] ss:$16 sps:$4 sm:$0xff]  }
  0x79   :  { %1170 = vmatpush1.bf16.msra.mxu0 %v2066_v63  ;;  %1256 = vmatpush1.bf16.msra.mxu1 %v2069_v10  ;;  %v2146_v10 = vld [vmem:[#allocation4 + $0x2a4] ss:$16 sps:$4 sm:$0xff]  }
  0x7a   :  { %1171 = vmatprep.subr.bf16.mxu0 %v2074_v1  ;;  %1257 = vmatprep.subr.bf16.mxu1 %v2077_v12  ;;  %v2144_v12 = vld [vmem:[#allocation4 + $0x2a0] ss:$16 sps:$4 sm:$0xff]  }
  0x7d   :  { %1172 = vmatpush1.bf16.msra.mxu0 %v2072_v3  ;;  %1258 = vmatpush1.bf16.msra.mxu1 %v2075_v14  ;;  %v2132_v3 = vld [vmem:[#allocation4 + $0x260] ss:$16 sps:$4 sm:$0xff]   ;;  %v2152_v14 = vld [vmem:[#allocation4 + $0x2c4] ss:$16 sps:$4 sm:$0xff]  }
  0x7e   :  { %1173 = vmatprep.subr.bf16.mxu0 %v2080_v5  ;;  %1259 = vmatprep.subr.bf16.mxu1 %v2083_v16  ;;  %v2150_v16 = vld [vmem:[#allocation4 + $0x2c0] ss:$16 sps:$4 sm:$0xff]  }
  0x81   :  { %1174 = vmatpush1.bf16.msra.mxu0 %v2078_v7  ;;  %1260 = vmatpush1.bf16.msra.mxu1 %v2081_v18  ;;  %v2143_v7 = vld [vmem:[#allocation4 + $0x28c] ss:$16 sps:$4 sm:$0xff]   ;;  %v2158_v18 = vld [vmem:[#allocation4 + $0x2e4] ss:$16 sps:$4 sm:$0xff]  }
  0x82   :  { %1175 = vmatprep.subr.bf16.mxu0 %v2086_v9  ;;  %1261 = vmatprep.subr.bf16.mxu1 %v2089_v20  ;;  %v2141_v9 = vld [vmem:[#allocation4 + $0x288] ss:$16 sps:$4 sm:$0xff]   ;;  %v2156_v20 = vld [vmem:[#allocation4 + $0x2e0] ss:$16 sps:$4 sm:$0xff]  }
  0x85   :  { %1176 = vmatpush1.bf16.msra.mxu0 %v2084_v11  ;;  %1262 = vmatpush1.bf16.msra.mxu1 %v2087_v21  ;;  %v2149_v11 = vld [vmem:[#allocation4 + $0x2ac] ss:$16 sps:$4 sm:$0xff]   ;;  %v2159_v21 = vld [vmem:[#allocation4 + $0x2e8] ss:$16 sps:$4 sm:$0xff]  }
  0x86   :  { %1177 = vmatprep.subr.bf16.mxu0 %v2092_v13  ;;  %1263 = vmatprep.subr.bf16.mxu1 %v2095_v22  ;;  %v2147_v13 = vld [vmem:[#allocation4 + $0x2a8] ss:$16 sps:$4 sm:$0xff]   ;;  %v2164_v22 = vld [vmem:[#allocation4 + $0x304] ss:$16 sps:$4 sm:$0xff]  }
  0x89   :  { %1178 = vmatpush1.bf16.msra.mxu0 %v2090_v15  ;;  %1264 = vmatpush1.bf16.msra.mxu1 %v2093_v23  ;;  %v2155_v15 = vld [vmem:[#allocation4 + $0x2cc] ss:$16 sps:$4 sm:$0xff]  }
  0x8a   :  { %1179 = vmatprep.subr.bf16.mxu0 %v2098_v17  ;;  %1265 = vmatprep.subr.bf16.mxu1 %v2101_v24  ;;  %v2153_v17 = vld [vmem:[#allocation4 + $0x2c8] ss:$16 sps:$4 sm:$0xff]   ;;  %v2167_v23 = vld [vmem:[#allocation4 + $0x30c] ss:$16 sps:$4 sm:$0xff]   ;;  %v2162_v24 = vld [vmem:[#allocation4 + $0x300] ss:$16 sps:$4 sm:$0xff]  }
  0x8d   :  { %1180 = vmatpush1.bf16.msra.mxu0 %v2096_v19  ;;  %1266 = vmatpush1.bf16.msra.mxu1 %v2099_v25  ;;  %v2161_v19 = vld [vmem:[#allocation4 + $0x2ec] ss:$16 sps:$4 sm:$0xff]   ;;  %v2165_v25 = vld [vmem:[#allocation4 + $0x308] ss:$16 sps:$4 sm:$0xff]  }
  0x8e   :  { %1181 = vmatprep.subr.bf16.mxu0 %v2104_v26  ;;  %1267 = vmatprep.subr.bf16.mxu1 %v2107_v27  ;;  %v2170_v26 = vld [vmem:[#allocation4 + $0x324] ss:$16 sps:$4 sm:$0xff]   ;;  %v2173_v27 = vld [vmem:[#allocation4 + $0x32c] ss:$16 sps:$4 sm:$0xff]  }
  0x91   :  { %1182 = vmatpush1.bf16.msra.mxu0 %v2102_v28  ;;  %1268 = vmatpush1.bf16.msra.mxu1 %v2105_v29  ;;  %v2168_v28 = vld [vmem:[#allocation4 + $0x320] ss:$16 sps:$4 sm:$0xff]   ;;  %v2171_v29 = vld [vmem:[#allocation4 + $0x328] ss:$16 sps:$4 sm:$0xff]  }
  0x92   :  { %1183 = vmatprep.subr.bf16.mxu0 %v2110_v30  ;;  %1269 = vmatprep.subr.bf16.mxu1 %v2113_v31  ;;  %v2176_v30 = vld [vmem:[#allocation4 + $0x344] ss:$16 sps:$4 sm:$0xff]   ;;  %v2179_v31 = vld [vmem:[#allocation4 + $0x34c] ss:$16 sps:$4 sm:$0xff]  }
  0x95   :  { %1184 = vmatpush1.bf16.msra.mxu0 %v2108_v32  ;;  %1270 = vmatpush1.bf16.msra.mxu1 %v2111_v33  ;;  %v2174_v32 = vld [vmem:[#allocation4 + $0x340] ss:$16 sps:$4 sm:$0xff]   ;;  %v2177_v33 = vld [vmem:[#allocation4 + $0x348] ss:$16 sps:$4 sm:$0xff]  }
  0x96   :  { %1196 = vmatprep.subr.bf16.mxu0 %v2116_v34  ;;  %1282 = vmatprep.subr.bf16.mxu1 %v2119_v35  ;;  %v2182_v34 = vld [vmem:[#allocation4 + $0x364] ss:$16 sps:$4 sm:$0xff]   ;;  %v2185_v35 = vld [vmem:[#allocation4 + $0x36c] ss:$16 sps:$4 sm:$0xff]  }
 0x12b   :  { %v299_v36 = vpop.f32.mrb[0].mxu0  ;;  %v342_v54 = vpop.f32.mrb[0].mxu1 }
 0x12c   :  { %v301_v37 = vpop.f32.mrb[1].mxu0  ;;  %v351_v39 = vmax.f32 %v299_v36, 0.0  ;;  %v353_v55 = vmax.f32 %v342_v54, 0.0  ;;  %v344_v56 = vpop.f32.mrb[1].mxu1  ;;  %v2180_v36 = vld [vmem:[#allocation4 + $0x360] ss:$16 sps:$4 sm:$0xff]  }
 0x12d   :  { %v303_v38 = vpop.f32.mrb[2].mxu0  ;;  %v352_v42 = vmax.f32 %v301_v37, 0.0  ;;  %v354_v59 = vmax.f32 %v344_v56, 0.0  ;;  %v346_v60 = vpop.f32.mrb[2].mxu1  ;;  %v2183_v37 = vld [vmem:[#allocation4 + $0x368] ss:$16 sps:$4 sm:$0xff]  }
 0x12e   :  { %v355_v40 = vmax.f32 %v303_v38, 0.0  ;;  %v305_v41 = vpop.f32.mrb[3].mxu0  ;;  %v357_v63 = vmax.f32 %v346_v60, 0.0  ;;  %v348_v0 = vpop.f32.mrb[3].mxu1  ;;  %v2188_v38 = vld [vmem:[#allocation4 + $0x384] ss:$16 sps:$4 sm:$0xff]  }
 0x12f   :  { %v356_v43 = vmax.f32 %v305_v41, 0.0  ;;  %v358_v1 = vmax.f32 %v348_v0, 0.0  ;;  %v2189_v41 = vld [vmem:[#allocation4 + $0x388] ss:$16 sps:$4 sm:$0xff]   ;;  %v2210_v54 = vld [vmem:[#allocation6 + $0x40] sm:$0xff]   ;;  %v2220_v0 = vld [vmem:[#allocation6 + $0x10] sm:$0xff]  }
 0x130   :  { %v359_v44 = vpack.c.bf16 %v355_v40, %v351_v39  ;;  %v2401_v2 = vpack.c.bf16 %v357_v63, %v353_v55  ;;  %v2191_v39 = vld [vmem:[#allocation4 + $0x38c] ss:$16 sps:$4 sm:$0xff]   ;;  %v2186_v40 = vld [vmem:[#allocation4 + $0x380] ss:$16 sps:$4 sm:$0xff]  }
 0x131   :  { %v360_v45 = vpack.c.bf16 %v356_v43, %v352_v42  ;;  %v362_v5 = vpack.c.bf16 %v358_v1, %v354_v59  ;;  %v2194_v42 = vld [vmem:[#allocation4 + $0x3a4] ss:$16 sps:$4 sm:$0xff]   ;;  %v2197_v43 = vld [vmem:[#allocation4 + $0x3ac] ss:$16 sps:$4 sm:$0xff]  }
 0x132   :  { %v2211_v55 = vld [vmem:[#allocation6 + $0xc0] sm:$0xff]   ;;  %v2215_v59 = vld [vmem:[#allocation6 + $0xc8] sm:$0xff]   ;;  %v2219_v63 = vld [vmem:[#allocation6 + $0xd0] sm:$0xff]  }
 0x133   :  { %1185 = vmatprep.mubr.bf16.mxu0 %v360_v45  ;;  %1271 = vmatprep.mubr.bf16.mxu1 %v360_v45  ;;  %v2195_v45 = vld [vmem:[#allocation4 + $0x3a8] ss:$16 sps:$4 sm:$0xff]   ;;  %v2212_v56 = vld [vmem:[#allocation6] sm:$0xff]   ;;  %v2221_v1 = vld [vmem:[#allocation6 + $0x90] sm:$0xff]  }
 0x134   :  { %1186 = vmatmul.mubr.bf16.vlgmr.msra.gmra.mrb[4].mxu0 %v359_v44  ;;  %1272 = vmatmul.mubr.bf16.vlgmr.msra.gmra.mrb[4].mxu1 %v359_v44  ;;  %v2192_v44 = vld [vmem:[#allocation4 + $0x3a0] ss:$16 sps:$4 sm:$0xff]   ;;  %v2216_v60 = vld [vmem:[#allocation6 + $0x8] sm:$0xff]  }
 0x135   :  { %1197 = vmatpush1.bf16.msra.mxu0 %v2114_v46  ;;  %1283 = vmatpush1.bf16.msra.mxu1 %v2117_v47  ;;  %v2200_v46 = vld [vmem:[#allocation4 + $0x3c4] ss:$16 sps:$4 sm:$0xff]   ;;  %v2203_v47 = vld [vmem:[#allocation4 + $0x3cc] ss:$16 sps:$4 sm:$0xff]  }
 0x136   :  { %1198 = vmatprep.subr.bf16.mxu0 %v2122_v48  ;;  %1284 = vmatprep.subr.bf16.mxu1 %v2125_v49  ;;  %v2198_v48 = vld [vmem:[#allocation4 + $0x3c0] ss:$16 sps:$4 sm:$0xff]   ;;  %v2201_v49 = vld [vmem:[#allocation4 + $0x3c8] ss:$16 sps:$4 sm:$0xff]  }
 0x137   :  { %1228 = vmatprep.mubr.bf16.mxu0 %v362_v5  ;;  %1314 = vmatprep.mubr.bf16.mxu1 %v362_v5  ;;  %v2224_v5 = vld [vmem:[#allocation6 + $0x18] sm:$0xff]  }
 0x139   :  { %1199 = vmatpush1.bf16.msra.mxu0 %v2120_v50  ;;  %1285 = vmatpush1.bf16.msra.mxu1 %v2123_v51  ;;  %v2206_v50 = vld [vmem:[#allocation4 + $0x3e4] ss:$16 sps:$4 sm:$0xff]   ;;  %v2209_v51 = vld [vmem:[#allocation4 + $0x3ec] ss:$16 sps:$4 sm:$0xff]  }
 0x13a   :  { %1200 = vmatprep.subr.bf16.mxu0 %v2128_v52  ;;  %1286 = vmatprep.subr.bf16.mxu1 %v2131_v53  ;;  %v2204_v52 = vld [vmem:[#allocation4 + $0x3e0] ss:$16 sps:$4 sm:$0xff]   ;;  %v2207_v53 = vld [vmem:[#allocation4 + $0x3e8] ss:$16 sps:$4 sm:$0xff]  }
 0x13d   :  { %1201 = vmatpush1.bf16.msra.mxu0 %v2126_v57  ;;  %1287 = vmatpush1.bf16.msra.mxu1 %v2129_v58  ;;  %v2213_v57 = vld [vmem:[#allocation6 + $0x80] sm:$0xff]   ;;  %v2214_v58 = vld [vmem:[#allocation6 + $0x48] sm:$0xff]  }
 0x13e   :  { %1202 = vmatprep.subr.bf16.mxu0 %v2134_v61  ;;  %1288 = vmatprep.subr.bf16.mxu1 %v2137_v62  ;;  %v2217_v61 = vld [vmem:[#allocation6 + $0x88] sm:$0xff]   ;;  %v2218_v62 = vld [vmem:[#allocation6 + $0x50] sm:$0xff]  }
 0x141   :  { %1203 = vmatpush1.bf16.msra.mxu0 %v2132_v3  ;;  %1289 = vmatpush1.bf16.msra.mxu1 %v2135_v4  ;;  %v2222_v3 = vld [vmem:[#allocation6 + $0x58] sm:$0xff]  }
 0x142   :  { %1204 = vmatprep.subr.bf16.mxu0 %v2140_v6  ;;  %1290 = vmatprep.subr.bf16.mxu1 %v2143_v7  ;;  %v2223_v4 = vld [vmem:[#allocation6 + $0xd8] sm:$0xff]   ;;  %v2226_v6 = vld [vmem:[#allocation6 + $0x60] sm:$0xff]  }
 0x143   :  { %v2227_v7 = vld [vmem:[#allocation6 + $0xe0] sm:$0xff]  }
 0x145   :  { %1205 = vmatpush1.bf16.msra.mxu0 %v2138_v8  ;;  %1291 = vmatpush1.bf16.msra.mxu1 %v2141_v9  ;;  %v2228_v8 = vld [vmem:[#allocation6 + $0x20] sm:$0xff]  }
 0x146   :  { %1206 = vmatprep.subr.bf16.mxu0 %v2146_v10  ;;  %1292 = vmatprep.subr.bf16.mxu1 %v2149_v11  ;;  %v2229_v9 = vld [vmem:[#allocation6 + $0xa0] sm:$0xff]   ;;  %v2230_v10 = vld [vmem:[#allocation6 + $0x68] sm:$0xff]  }
 0x147   :  { %v2231_v11 = vld [vmem:[#allocation6 + $0xe8] sm:$0xff]  }
 0x149   :  { %1207 = vmatpush1.bf16.msra.mxu0 %v2144_v12  ;;  %1293 = vmatpush1.bf16.msra.mxu1 %v2147_v13  ;;  %v2232_v12 = vld [vmem:[#allocation6 + $0x28] sm:$0xff]  }
 0x14a   :  { %1208 = vmatprep.subr.bf16.mxu0 %v2152_v14  ;;  %1294 = vmatprep.subr.bf16.mxu1 %v2155_v15  ;;  %v2233_v13 = vld [vmem:[#allocation6 + $0xa8] sm:$0xff]   ;;  %v2234_v14 = vld [vmem:[#allocation6 + $0x70] sm:$0xff]  }
 0x14b   :  { %v2235_v15 = vld [vmem:[#allocation6 + $0xf0] sm:$0xff]  }
 0x14d   :  { %1209 = vmatpush1.bf16.msra.mxu0 %v2150_v16  ;;  %1295 = vmatpush1.bf16.msra.mxu1 %v2153_v17  ;;  %v2236_v16 = vld [vmem:[#allocation6 + $0x30] sm:$0xff]  }
 0x14e   :  { %1210 = vmatprep.subr.bf16.mxu0 %v2158_v18  ;;  %1296 = vmatprep.subr.bf16.mxu1 %v2161_v19  ;;  %v2237_v17 = vld [vmem:[#allocation6 + $0xb0] sm:$0xff]   ;;  %v2238_v18 = vld [vmem:[#allocation6 + $0x78] sm:$0xff]  }
 0x14f   :  { %v2239_v19 = vld [vmem:[#allocation6 + $0xf8] sm:$0xff]  }
 0x151   :  { %1211 = vmatpush1.bf16.msra.mxu0 %v2156_v20  ;;  %1297 = vmatpush1.bf16.msra.mxu1 %v2159_v21  ;;  %v2240_v20 = vld [vmem:[#allocation6 + $0x38] sm:$0xff]  }
 0x152   :  { %1212 = vmatprep.subr.bf16.mxu0 %v2164_v22  ;;  %1298 = vmatprep.subr.bf16.mxu1 %v2167_v23  ;;  %v2241_v21 = vld [vmem:[#allocation6 + $0xb8] sm:$0xff]   ;;  %v493_v22 = vlaneseq }
 0x154   :  { %v494_v23 = vshrl.u32 %v493_v22, 7 }
 0x155   :  { %1213 = vmatpush1.bf16.msra.mxu0 %v2162_v24  ;;  %1299 = vmatpush1.bf16.msra.mxu1 %v2165_v25 }
 0x156   :  { %1214 = vmatprep.subr.bf16.mxu0 %v2170_v26  ;;  %1300 = vmatprep.subr.bf16.mxu1 %v2173_v27  ;;  %v495_v24 = vsub.s32 0, %v494_v23  ;;  %v503_v25 = vsub.s32 2, %v494_v23  ;;  %v491_v26 = vld [vmem:[%s2417_s3] sm:$0xf]  ;;  %v499_v27 = vsub.s32 1, %v494_v23 }
 0x159   :  { %1215 = vmatpush1.bf16.msra.mxu0 %v2168_v28  ;;  %1301 = vmatpush1.bf16.msra.mxu1 %v2171_v29  ;;  %v507_v28 = vsub.s32 3, %v494_v23  ;;  %v496_v29 = vrot.slane %v491_v26, %v495_v24 }
 0x15a   :  { %1216 = vmatprep.subr.bf16.mxu0 %v2176_v30  ;;  %1302 = vmatprep.subr.bf16.mxu1 %v2179_v31  ;;  %v504_v30 = vrot.slane %v491_v26, %v503_v25  ;;  %v500_v31 = vrot.slane %v491_v26, %v499_v27 }
 0x15d   :  { %1217 = vmatpush1.bf16.msra.mxu0 %v2174_v32  ;;  %1303 = vmatpush1.bf16.msra.mxu1 %v2177_v33  ;;  %v508_v32 = vrot.slane %v491_v26, %v507_v28 }
 0x15e   :  { %1218 = vmatprep.subr.bf16.mxu0 %v2182_v34  ;;  %1304 = vmatprep.subr.bf16.mxu1 %v2185_v35 }
 0x161   :  { %1219 = vmatpush1.bf16.msra.mxu0 %v2180_v36  ;;  %1305 = vmatpush1.bf16.msra.mxu1 %v2183_v37 }
 0x162   :  { %1220 = vmatprep.subr.bf16.mxu0 %v2188_v38  ;;  %1306 = vmatprep.subr.bf16.mxu1 %v2191_v39 }
 0x165   :  { %1221 = vmatpush1.bf16.msra.mxu0 %v2186_v40  ;;  %1307 = vmatpush1.bf16.msra.mxu1 %v2189_v41 }
 0x166   :  { %1222 = vmatprep.subr.bf16.mxu0 %v2194_v42  ;;  %1308 = vmatprep.subr.bf16.mxu1 %v2197_v43 }
 0x169   :  { %1223 = vmatpush1.bf16.msra.mxu0 %v2192_v44  ;;  %1309 = vmatpush1.bf16.msra.mxu1 %v2195_v45 }
 0x16a   :  { %1224 = vmatprep.subr.bf16.mxu0 %v2200_v46  ;;  %1310 = vmatprep.subr.bf16.mxu1 %v2203_v47 }
 0x16d   :  { %1225 = vmatpush1.bf16.msra.mxu0 %v2198_v48  ;;  %1311 = vmatpush1.bf16.msra.mxu1 %v2201_v49 }
 0x16e   :  { %1226 = vmatprep.subr.bf16.mxu0 %v2206_v50  ;;  %1312 = vmatprep.subr.bf16.mxu1 %v2209_v51 }
 0x171   :  { %1227 = vmatpush1.bf16.msra.mxu0 %v2204_v52  ;;  %1313 = vmatpush1.bf16.msra.mxu1 %v2207_v53 }
 0x172   :  { %1901 = vmatprep.subr.bf16.mxu0 %v2210_v54  ;;  %1923 = vmatprep.subr.bf16.mxu1 %v2211_v55 }
 0x174   :  { %1229 = vmatmul.mubr.bf16.vlgmr.msra.gmra.mrb[4].mxu0 %v2401_v2  ;;  %1315 = vmatmul.mubr.bf16.vlgmr.msra.gmra.mrb[4].mxu1 %v2401_v2  ;;  %v2225_v2 = vld [vmem:[#allocation6 + $0x98] sm:$0xff]  }
 0x175   :  { %1902 = vmatpush3.bf16.msra.mxu0 %v2212_v56  ;;  %1924 = vmatpush3.bf16.msra.mxu1 %v2213_v57 }
 0x176   :  { %1903 = vmatprep.subr.bf16.mxu0 %v2214_v58  ;;  %1925 = vmatprep.subr.bf16.mxu1 %v2215_v59 }
 0x179   :  { %1904 = vmatpush3.bf16.msra.mxu0 %v2216_v60  ;;  %1926 = vmatpush3.bf16.msra.mxu1 %v2217_v61 }
 0x17a   :  { %1905 = vmatprep.subr.bf16.mxu0 %v2218_v62  ;;  %1927 = vmatprep.subr.bf16.mxu1 %v2219_v63  ;;  %v1859_v63 = vld [vmem:[%s2419_s5] ss:$0 sm:$0xff] }
 0x17d   :  { %1906 = vmatpush3.bf16.msra.mxu0 %v2220_v0  ;;  %1928 = vmatpush3.bf16.msra.mxu1 %v2221_v1 }
 0x17e   :  { %1907 = vmatprep.subr.bf16.mxu0 %v2222_v3  ;;  %1929 = vmatprep.subr.bf16.mxu1 %v2223_v4 }
 0x181   :  { %1908 = vmatpush3.bf16.msra.mxu0 %v2224_v5  ;;  %1930 = vmatpush3.bf16.msra.mxu1 %v2225_v2 }
 0x182   :  { %1909 = vmatprep.subr.bf16.mxu0 %v2226_v6  ;;  %1931 = vmatprep.subr.bf16.mxu1 %v2227_v7 }
 0x185   :  { %1910 = vmatpush3.bf16.msra.mxu0 %v2228_v8  ;;  %1932 = vmatpush3.bf16.msra.mxu1 %v2229_v9 }
 0x186   :  { %1911 = vmatprep.subr.bf16.mxu0 %v2230_v10  ;;  %1933 = vmatprep.subr.bf16.mxu1 %v2231_v11 }
 0x189   :  { %1912 = vmatpush3.bf16.msra.mxu0 %v2232_v12  ;;  %1934 = vmatpush3.bf16.msra.mxu1 %v2233_v13 }
 0x18a   :  { %1913 = vmatprep.subr.bf16.mxu0 %v2234_v14  ;;  %1935 = vmatprep.subr.bf16.mxu1 %v2235_v15 }
 0x18d   :  { %1914 = vmatpush3.bf16.msra.mxu0 %v2236_v16  ;;  %1936 = vmatpush3.bf16.msra.mxu1 %v2237_v17 }
 0x18e   :  { %1915 = vmatprep.subr.bf16.mxu0 %v2238_v18  ;;  %1937 = vmatprep.subr.bf16.mxu1 %v2239_v19 }
 0x191   :  { %1916 = vmatpush3.bf16.msra.mxu0 %v2240_v20  ;;  %1938 = vmatpush3.bf16.msra.mxu1 %v2241_v21 }
 0x247   :  { %v1230_v33 = vpop.f32.mrb[4].mxu0  ;;  %v1316_v34 = vpop.f32.mrb[4].mxu1 }
 0x248   :  { %v1945_v35 = vadd.f32 %v1230_v33, %v496_v29  ;;  %v1949_v36 = vadd.f32 %v1316_v34, %v504_v30  ;;  %v1232_v37 = vpop.f32.mrb[5].mxu0  ;;  %v1318_v38 = vpop.f32.mrb[5].mxu1 }
 0x249   :  { %v1946_v39 = vadd.f32 %v1232_v37, %v500_v31  ;;  %v1950_v40 = vadd.f32 %v1318_v38, %v508_v32  ;;  %v1234_v41 = vpop.f32.mrb[6].mxu0  ;;  %v1320_v42 = vpop.f32.mrb[6].mxu1 }
 0x24a   :  { %v1947_v43 = vadd.f32 %v1234_v41, %v496_v29  ;;  %v1951_v44 = vadd.f32 %v1320_v42, %v504_v30  ;;  %v1236_v45 = vpop.f32.mrb[7].mxu0  ;;  %v1322_v46 = vpop.f32.mrb[7].mxu1  ;;  %v1325_v49 = vmax.f32 %v1945_v35, 0.0  ;;  %v1327_v50 = vmax.f32 %v1949_v36, 0.0 }
 0x24b   :  { %v1948_v47 = vadd.f32 %v1236_v45, %v500_v31  ;;  %v1952_v48 = vadd.f32 %v1322_v46, %v508_v32  ;;  %v1326_v53 = vmax.f32 %v1946_v39, 0.0  ;;  %v1328_v54 = vmax.f32 %v1950_v40, 0.0 }
 0x24c   :  { %v1329_v51 = vmax.f32 %v1947_v43, 0.0  ;;  %v1331_v52 = vmax.f32 %v1951_v44, 0.0 }
 0x24d   :  { %v1330_v55 = vmax.f32 %v1948_v47, 0.0  ;;  %v1332_v56 = vmax.f32 %v1952_v48, 0.0 }
 0x24e   :  { %v1333_v57 = vpack.c.bf16 %v1329_v51, %v1325_v49  ;;  %v1335_v58 = vpack.c.bf16 %v1331_v52, %v1327_v50 }
 0x24f   :  { %v1334_v59 = vpack.c.bf16 %v1330_v55, %v1326_v53  ;;  %v1336_v60 = vpack.c.bf16 %v1332_v56, %v1328_v54 }
 0x251   :  { %1632 = vmatprep.mubr.bf16.mxu0 %v1334_v59  ;;  %1673 = vmatprep.mubr.bf16.mxu1 %v1336_v60 }
 0x252   :  { %1633 = vmatmul.mubr.bf16.vlgmr.msra.gmra.mrb[8].mxu0 %v1333_v57  ;;  %1674 = vmatmul.mubr.bf16.vlgmr.msra.gmra.mrb[8].mxu1 %v1335_v58 }
 0x325   :  { %v1917_v61 = vpop.f32.mrb[8].mxu0  ;;  %v1939_v62 = vpop.f32.mrb[8].mxu1 }
 0x326   :  { %v1918_v0 = vpop.f32.mrb[9].mxu0  ;;  %v1940_v1 = vpop.f32.mrb[9].mxu1 }
 0x327   :  { %v1919_v3 = vadd.f32 %v1918_v0, %v1917_v61  ;;  %v1941_v4 = vadd.f32 %v1940_v1, %v1939_v62  ;;  %v1920_v5 = vpop.f32.mrb[10].mxu0  ;;  %v1942_v2 = vpop.f32.mrb[10].mxu1 }
 0x328   :  { %v1921_v6 = vpop.f32.mrb[11].mxu0  ;;  %v1943_v7 = vpop.f32.mrb[11].mxu1 }
 0x329   :  { %v1635_v8 = vadd.f32 %v1919_v3, %v1859_v63  ;;  %v1922_v9 = vadd.f32 %v1921_v6, %v1920_v5  ;;  %v1944_v10 = vadd.f32 %v1943_v7, %v1942_v2 }
 0x32b   :  { %v1676_v11 = vadd.f32 %v1941_v4, %v1635_v8  ;;  %v1638_v12 = vadd.f32 %v1922_v9, %v1859_v63 }
 0x32d   :  { %v1679_v13 = vadd.f32 %v1944_v10, %v1638_v12 }
 0x32f   :  { %v1899_v14 = vpack.c.bf16 %v1679_v13, %v1676_v11 }
 0x331   :  { %1900 = vst [vmem:[%s2420_s6] sm:$0xff] %v1899_v14  }
 0x332   :  { %1696 = vsyncpa [#allocation3], 1 }
 0x333   :  { %1697 = vsyncpa [#allocation5], 1 }

</bundles_post_ra>
